<compile_context>
chip_gen: v7x
topology: tpu7x:2x2x1
jax: 0.10.0
libtpu: 0.0.40
codegen_flags: <defaults>
</compile_context>

<pallas_src>
import functools
import math

import jax
import jax.numpy as jnp
from jax.experimental import pallas as pl
from jax.experimental.pallas import tpu as pltpu


# ---------------------------------------------------------------------------
# Single fused Pallas kernel: whole-array VMEM blocks (small shapes fit VMEM)
# ---------------------------------------------------------------------------
def _net_kernel(x_ref, adj_ref, w0_ref, b0_ref, weff_ref, w1_ref, b1_ref,
                o_ref, *, alpha, num_layers):
    # lins[0] + relu (small f32 matmul on the MXU).
    x = jnp.dot(x_ref[...], w0_ref[...], preferred_element_type=jnp.float32)
    x = jnp.maximum(x + b0_ref[...], 0.0)

    # alpha*x0 is loop-invariant: compute it once (hoisted out of the loop).
    ax0 = alpha * x

    # adj_eff = (1-alpha)*adj_t, pre-scaled + cast to bf16 in the wrapper so
    # the kernel's per-layer work is: bf16 MXU matmul -> f32 add -> f32 matmul.
    adj = adj_ref[...]

    for l in range(num_layers):                       # unrolled; L is static
        prop = jnp.dot(adj, x.astype(jnp.bfloat16),   # (1-alpha)*(adj_t @ x)
                       preferred_element_type=jnp.float32)
        s = prop + ax0                                # initial-residual mix
        # beta folded into W_eff = (1-beta)*I + beta*W  =>  h = s @ W_eff
        h = jnp.dot(s, weff_ref[l], preferred_element_type=jnp.float32)
        x = jnp.maximum(h + x, 0.0)                   # Net residual + relu

    # lins[1]; output buffer is lane-dense (last dim padded to 128).
    y = jnp.dot(x, w1_ref[...], preferred_element_type=jnp.float32)
    o_ref[...] = (y + b1_ref[...]).astype(o_ref.dtype)


_VMEM = pl.BlockSpec(memory_space=pltpu.MemorySpace.VMEM)


# ---------------------------------------------------------------------------
# Full Net forward: one pallas_call; weight prep (beta fold, padding) in JAX
# ---------------------------------------------------------------------------
def net_forward(x, adj_t, params, *, alpha, theta, num_layers):
    # dropout p = 0.0 (and eval mode) -> identity, so no dropout op is emitted.
    w0_t, b0, w1_t, b1, conv_ws = params
    n = x.shape[0]
    hidden = w0_t.shape[1]
    n_cls = w1_t.shape[1]

    # Fold beta_l = log(theta/l + 1) into each conv weight once, outside the
    # kernel: W_eff_l = (1-beta_l)*I + beta_l*W_l   (stacked to [L, H, H]).
    eye = jnp.eye(hidden, dtype=jnp.float32)
    w_eff = jnp.stack([
        (1.0 - math.log(theta / (l + 1) + 1.0)) * eye
        + math.log(theta / (l + 1) + 1.0) * conv_ws[l]
        for l in range(num_layers)
    ])

    # Fold (1-alpha) into the propagation operator (loop-invariant), then cast
    # to bf16 for the MXU; accumulation stays f32 inside the kernel.
    adj_eff = ((1.0 - alpha) * adj_t).astype(jnp.bfloat16)

    # Lane-dense final projection: pad the out-dim up to a multiple of 128 so
    # the output writeback uses full (unmasked) vector stores.
    n_out = ((n_cls + 127) // 128) * 128
    pad = n_out - n_cls
    w1_p = jnp.pad(w1_t, ((0, 0), (0, pad)))
    b1_p = jnp.pad(b1, ((0, 0), (0, pad)))

    out_padded = pl.pallas_call(
        functools.partial(_net_kernel, alpha=alpha, num_layers=num_layers),
        out_shape=jax.ShapeDtypeStruct((n, n_out), jnp.float32),
        in_specs=[_VMEM] * 7,
        out_specs=_VMEM,
        compiler_params=pltpu.CompilerParams(vmem_limit_bytes=48 << 20),
    )(x, adj_eff, w0_t, b0, w_eff, w1_p, b1_p)

    # TODO(synk): for large N the dense [N,N] adj cannot stay whole in VMEM
    # (especially v7x's 64 MiB/TC); the adj@x matmul must then be tiled per
    # layer with a (rows 'parallel', K 'arbitrary') grid or made block-sparse
    # via PrefetchScalarGridSpec instead of this fully-fused single block.
    return out_padded[:, :n_cls]


if __name__ == "__main__":
    # Small synthetic problem consistent with the module's shapes.
    N = 64               # number of graph nodes
    num_features = 16
    hidden_channels = 32
    num_classes = 8
    num_layers = 2
    alpha, theta = 0.1, 0.5

    key = jax.random.PRNGKey(0)
    keys = jax.random.split(key, 5 + num_layers)

    # Node features.
    x = jax.random.normal(keys[0], (N, num_features), dtype=jnp.float32)

    # Dense symmetric, self-looped, row-normalized propagation matrix (the
    # conv uses normalize=False, so adj_t is consumed as given).
    a = (jax.random.uniform(keys[1], (N, N)) < 0.1).astype(jnp.float32)
    a = jnp.minimum(a + a.T, 1.0) + jnp.eye(N, dtype=jnp.float32)
    adj_t = a / jnp.sum(a, axis=1, keepdims=True)

    # Deterministic parameters.  PyTorch Linear stores weight as [out, in];
    # the kernel takes the transposed [in, out] form.  Biases pre-shaped (1,o).
    w0 = 0.1 * jax.random.normal(keys[2], (hidden_channels, num_features), jnp.float32)
    b0 = (0.01 * jnp.arange(hidden_channels, dtype=jnp.float32)).reshape(1, -1)
    w1 = 0.1 * jax.random.normal(keys[3], (num_classes, hidden_channels), jnp.float32)
    b1 = (0.01 * jnp.arange(num_classes, dtype=jnp.float32)).reshape(1, -1)
    conv_ws = [
        0.1 * jax.random.normal(keys[5 + l], (hidden_channels, hidden_channels),
                                jnp.float32)
        for l in range(num_layers)
    ]
    params = (w0.T, b0, w1.T, b1, conv_ws)

    out = net_forward(x, adj_t, params, alpha=alpha, theta=theta,
                      num_layers=num_layers)
    out = jax.block_until_ready(out)
    assert out.shape == (N, num_classes) and out.dtype == jnp.float32
    print("KERNEL_OK")
</pallas_src>

<mosaic_0001>
module attributes {stable_mosaic.version = 11 : i64} {
  func.func @_net_kernel(%arg0: memref<64x16xf32, #tpu.memory_space<vmem>>, %arg1: memref<64x64xbf16, #tpu.memory_space<vmem>>, %arg2: memref<16x32xf32, #tpu.memory_space<vmem>>, %arg3: memref<1x32xf32, #tpu.memory_space<vmem>>, %arg4: memref<2x32x32xf32, #tpu.memory_space<vmem>>, %arg5: memref<32x128xf32, #tpu.memory_space<vmem>>, %arg6: memref<1x128xf32, #tpu.memory_space<vmem>>, %arg7: memref<64x128xf32, #tpu.memory_space<vmem>>) attributes {dimension_semantics = [], scalar_prefetch = 0 : i64, scratch_operands = 0 : i64, tpu.core_type = #tpu.core_type<tc>} {
    %c0 = arith.constant 0 : index
    %c0_0 = arith.constant 0 : index
    %0 = vector.load %arg0[%c0, %c0_0] : memref<64x16xf32, #tpu.memory_space<vmem>>, vector<64x16xf32>
    %c0_1 = arith.constant 0 : index
    %c0_2 = arith.constant 0 : index
    %1 = vector.load %arg2[%c0_1, %c0_2] : memref<16x32xf32, #tpu.memory_space<vmem>>, vector<16x32xf32>
    %cst = arith.constant dense<0.000000e+00> : vector<64x32xf32>
    %2 = tpu.matmul %0, %1, %cst {dimension_numbers = #tpu.dot_dimension_numbers<[1], [0], [0], [1], [0, 0, 1, 1], [], []>} : vector<64x16xf32>, vector<16x32xf32>, vector<64x32xf32> -> vector<64x32xf32>
    %c0_3 = arith.constant 0 : index
    %c0_4 = arith.constant 0 : index
    %3 = vector.load %arg3[%c0_3, %c0_4] : memref<1x32xf32, #tpu.memory_space<vmem>>, vector<1x32xf32>
    %4 = vector.broadcast %3 : vector<1x32xf32> to vector<64x32xf32>
    %5 = arith.addf %2, %4 : vector<64x32xf32>
    %cst_5 = arith.constant 0.000000e+00 : f32
    %6 = vector.broadcast %cst_5 : f32 to vector<64x32xf32>
    %7 = arith.maximumf %5, %6 : vector<64x32xf32>
    %cst_6 = arith.constant 1.000000e-01 : f32
    %8 = vector.broadcast %cst_6 : f32 to vector<64x32xf32>
    %9 = arith.mulf %8, %7 : vector<64x32xf32>
    %c0_7 = arith.constant 0 : index
    %c0_8 = arith.constant 0 : index
    %10 = vector.load %arg1[%c0_7, %c0_8] : memref<64x64xbf16, #tpu.memory_space<vmem>>, vector<64x64xbf16>
    %11 = arith.truncf %7 : vector<64x32xf32> to vector<64x32xbf16>
    %cst_9 = arith.constant dense<0.000000e+00> : vector<64x32xf32>
    %12 = tpu.matmul %10, %11, %cst_9 {dimension_numbers = #tpu.dot_dimension_numbers<[1], [0], [0], [1], [0, 0, 1, 1], [], []>} : vector<64x64xbf16>, vector<64x32xbf16>, vector<64x32xf32> -> vector<64x32xf32>
    %13 = arith.addf %12, %9 : vector<64x32xf32>
    %c0_10 = arith.constant 0 : index
    %c0_11 = arith.constant 0 : index
    %c0_12 = arith.constant 0 : index
    %14 = vector.load %arg4[%c0_10, %c0_11, %c0_12] : memref<2x32x32xf32, #tpu.memory_space<vmem>>, vector<1x32x32xf32>
    %15 = vector.shape_cast %14 : vector<1x32x32xf32> to vector<32x32xf32>
    %cst_13 = arith.constant dense<0.000000e+00> : vector<64x32xf32>
    %16 = tpu.matmul %13, %15, %cst_13 {dimension_numbers = #tpu.dot_dimension_numbers<[1], [0], [0], [1], [0, 0, 1, 1], [], []>} : vector<64x32xf32>, vector<32x32xf32>, vector<64x32xf32> -> vector<64x32xf32>
    %17 = arith.addf %16, %7 : vector<64x32xf32>
    %cst_14 = arith.constant 0.000000e+00 : f32
    %18 = vector.broadcast %cst_14 : f32 to vector<64x32xf32>
    %19 = arith.maximumf %17, %18 : vector<64x32xf32>
    %20 = arith.truncf %19 : vector<64x32xf32> to vector<64x32xbf16>
    %cst_15 = arith.constant dense<0.000000e+00> : vector<64x32xf32>
    %21 = tpu.matmul %10, %20, %cst_15 {dimension_numbers = #tpu.dot_dimension_numbers<[1], [0], [0], [1], [0, 0, 1, 1], [], []>} : vector<64x64xbf16>, vector<64x32xbf16>, vector<64x32xf32> -> vector<64x32xf32>
    %22 = arith.addf %21, %9 : vector<64x32xf32>
    %c1 = arith.constant 1 : index
    %c0_16 = arith.constant 0 : index
    %c0_17 = arith.constant 0 : index
    %23 = vector.load %arg4[%c1, %c0_16, %c0_17] : memref<2x32x32xf32, #tpu.memory_space<vmem>>, vector<1x32x32xf32>
    %24 = vector.shape_cast %23 : vector<1x32x32xf32> to vector<32x32xf32>
    %cst_18 = arith.constant dense<0.000000e+00> : vector<64x32xf32>
    %25 = tpu.matmul %22, %24, %cst_18 {dimension_numbers = #tpu.dot_dimension_numbers<[1], [0], [0], [1], [0, 0, 1, 1], [], []>} : vector<64x32xf32>, vector<32x32xf32>, vector<64x32xf32> -> vector<64x32xf32>
    %26 = arith.addf %25, %19 : vector<64x32xf32>
    %cst_19 = arith.constant 0.000000e+00 : f32
    %27 = vector.broadcast %cst_19 : f32 to vector<64x32xf32>
    %28 = arith.maximumf %26, %27 : vector<64x32xf32>
    %c0_20 = arith.constant 0 : index
    %c0_21 = arith.constant 0 : index
    %29 = vector.load %arg5[%c0_20, %c0_21] : memref<32x128xf32, #tpu.memory_space<vmem>>, vector<32x128xf32>
    %cst_22 = arith.constant dense<0.000000e+00> : vector<64x128xf32>
    %30 = tpu.matmul %28, %29, %cst_22 {dimension_numbers = #tpu.dot_dimension_numbers<[1], [0], [0], [1], [0, 0, 1, 1], [], []>} : vector<64x32xf32>, vector<32x128xf32>, vector<64x128xf32> -> vector<64x128xf32>
    %c0_23 = arith.constant 0 : index
    %c0_24 = arith.constant 0 : index
    %31 = vector.load %arg6[%c0_23, %c0_24] : memref<1x128xf32, #tpu.memory_space<vmem>>, vector<1x128xf32>
    %32 = vector.broadcast %31 : vector<1x128xf32> to vector<64x128xf32>
    %33 = arith.addf %30, %32 : vector<64x128xf32>
    %c0_25 = arith.constant 0 : index
    %c0_26 = arith.constant 0 : index
    %34 = vector.load %arg7[%c0_25, %c0_26] : memref<64x128xf32, #tpu.memory_space<vmem>>, vector<64x128xf32>
    tpu.vector_store %arg7[%c0_25, %c0_26], %33 {strides = array<i32>} : memref<64x128xf32, #tpu.memory_space<vmem>>, vector<64x128xf32>,
    return
  }
}

</mosaic_0001>

<bundles_post_ra>
// kernel: tpu_custom_call.1
= control target key start
LH: loop header
LB: loop body
LE: loop exit
PB: predicated region body
PF: predicated region fallthrough
CT: control target
= control target key end

     0   :  { %12 = vsyncpa [#allocation3], 0  ;;  %s1522_s0 = inlined_call_operand.vmem [shape: f32[64,16], index: 0, kind: input, shape index: {}]   ;;  %s1523_s1 = inlined_call_operand.hbm [shape: bf16[64,64], index: 1, kind: input, shape index: {}]   ;;  %s1524_s2 = inlined_call_operand.hbm [shape: f32[16,32], index: 2, kind: input, shape index: {}]   ;;  %s1525_s3 = inlined_call_operand.vmem [shape: f32[1,32], index: 3, kind: input, shape index: {}]   ;;  %s1526_s4 = inlined_call_operand.vmem [shape: f32[2,32,32], index: 4, kind: input, shape index: {}]   ;;  %s1527_s5 = inlined_call_operand.vmem [shape: f32[32,128], index: 5, kind: input, shape index: {}]   ;;  %s1528_s6 = inlined_call_operand.vmem [shape: f32[1,128], index: 6, kind: input, shape index: {}]   ;;  %s1529_s7 = inlined_call_operand.hbm [shape: f32[64,128], index: 7, kind: output, shape index: {}]  }
   0x1   :  { %13 = vsyncpa [#allocation6], 0 }
   0x2   :  { %14 = vsyncpa [#allocation4], 0  ;;  %s1187_s24 = smov [#allocation2]   ;;  %s1115_s28 = scalar_lea.hbm %s1523_s1, 512 }
   0x3   :  { %s22_s25 = sshll.u32 %s1187_s24, 4  ;;  %p1116_p0 = scmp.ne.s32.totalorder %s1523_s1, %s1115_s28  ;;  %s23_s25 = int_to_ptr.vmem [resolvable:$true] %s22_s25 }
   0x4   :  { %p1119_p1 = scmp.lt.u32.totalorder %s1115_s28, %s1523_s1 }
   0x6   :  { %p1121_p2 = pnand %p1119_p1, %p1116_p0 }
   0x8   :  { %1124 = shalt.err (!%p1121_p2)
}
   0x9   :  { %s1125_s10 = scalar_lea.vmem %s23_s25, 512  ;;  %p1130_p4 = scmp.lt.s32.totalorder %s23_s25, %s23_s25 }
   0xa   :  { %p1126_p3 = scmp.ne.s32.totalorder %s23_s25, %s1125_s10  ;;  %p1131_p5 = scmp.lt.s32.totalorder %s1125_s10, %s1125_s10 }
   0xc   :  { %p1132_p6 = por %p1131_p5, %p1130_p4 }
   0xe   :  { %p1133_p7 = pnand %p1132_p6, %p1126_p3 }
  0x10   :  { %1136 = shalt.err (!%p1133_p7)
}
  0x11   :  { %s1188_s11 = smov 64   ;;  %s1189_s12 = smov 4  }
  0x12   :  { %28 = dma.hbm_to_vmem [thread:$0]  %s1523_s1, 512, %s23_s25, [#allocation3], %s1188_s11, %s1188_s11, %s1189_s12  }
  0x13   :  { %s1190_s15 = smov [#allocation5]   ;;  %s1137_s19 = scalar_lea.hbm %s1524_s2, 256 }
  0x14   :  { %s34_s16 = sshll.u32 %s1190_s15, 4  ;;  %p1138_p8 = scmp.ne.s32.totalorder %s1524_s2, %s1137_s19  ;;  %s35_s16 = int_to_ptr.vmem [resolvable:$true] %s34_s16 }
  0x15   :  { %p1141_p9 = scmp.lt.u32.totalorder %s1137_s19, %s1524_s2 }
  0x17   :  { %p1143_p10 = pnand %p1141_p9, %p1138_p8 }
  0x19   :  { %1146 = shalt.err (!%p1143_p10)
}
  0x1a   :  { %s1147_s24 = scalar_lea.vmem %s35_s16, 256  ;;  %p1152_p12 = scmp.lt.s32.totalorder %s35_s16, %s35_s16 }
  0x1b   :  { %p1148_p11 = scmp.ne.s32.totalorder %s35_s16, %s1147_s24  ;;  %p1153_p13 = scmp.lt.s32.totalorder %s1147_s24, %s1147_s24 }
  0x1d   :  { %p1154_p0 = por %p1153_p13, %p1152_p12 }
  0x1f   :  { %p1155_p1 = pnand %p1154_p0, %p1148_p11 }
  0x21   :  { %1158 = shalt.err (!%p1155_p1)
}
  0x22   :  { %s1191_s1 = smov 128   ;;  %s1192_s25 = smov 8  }
  0x23   :  { %40 = dma.hbm_to_vmem [thread:$0]  %s1524_s2, 256, %s35_s16, [#allocation6], %s1191_s1, %s1191_s1, %s1192_s25  }
  0x24   :  { %1181 = dma.done.wait [#allocation3], 512  }
  0x25   :  { %1182 = vsyncadd [#allocation3], 4294966784 }
  0x26   :  { %1183 = dma.done.wait [#allocation6], 256  }
  0x27   :  { %1184 = vsyncadd [#allocation6], 4294967040  ;;  %vm73_vm0 = vcmask 130048   ;;  %v64_v0 = vld [vmem:[#allocation5] sm:$0xff]  ;;  %v65_v1 = vld [vmem:[#allocation5 + $0x8] sm:$0xff]  ;;  %vm251_vm1 = vcmask 523264  }
  0x28   :  { %v56_v2 = vld [vmem:[%s1522_s0] sm:$0xff]  ;;  %v1068_v3 = vpack.c.bf16 %v65_v1, %v64_v0  ;;  %v57_v4 = vld [vmem:[%s1522_s0 + $0x8] sm:$0xff]  ;;  %v58_v5 = vld [vmem:[%s1522_s0 + $0x10] sm:$0xff]  ;;  %vm333_vm2 = vcmask 261120   ;;  %s1193_s21 = smov [#allocation7]  }
  0x29   :  { %964 = vmatprep.mubr.msk.f32.mxu0 %vm73_vm0, %v56_v2  ;;  %v59_v6 = vld [vmem:[%s1522_s0 + $0x18] sm:$0xff]  ;;  %v60_v7 = vld [vmem:[%s1522_s0 + $0x20] sm:$0xff]  ;;  %v61_v8 = vld [vmem:[%s1522_s0 + $0x28] sm:$0xff]  ;;  %s835_s22 = sshll.u32 %s1193_s21, 4  ;;  %s836_s22 = int_to_ptr.vmem [resolvable:$true] %s835_s22 }
  0x2a   :  { %1069 = vmatprep.subr.bf16.mxu0 %v1068_v3  ;;  %v62_v9 = vld [vmem:[%s1522_s0 + $0x30] sm:$0xff]  ;;  %v63_v10 = vld [vmem:[%s1522_s0 + $0x38] sm:$0xff]  ;;  %v1293_v11 = vld [vmem:[#allocation2] sm:$0xff]   ;;  %p1164_p3 = scmp.lt.s32.totalorder %s836_s22, %s836_s22 }
  0x2b   :  { %1071 = vmatpush3.bf16.msra.mxu0 %v1068_v3  ;;  %984 = vmatprep.mubr.msk.bf16.mxu1 %vm251_vm1, %v1293_v11  ;;  %v329_v12 = vld [vmem:[%s1526_s4] sm:$0xff]  ;;  %v330_v13 = vld [vmem:[%s1526_s4 + $0x8] sm:$0xff]  ;;  %v331_v14 = vld [vmem:[%s1526_s4 + $0x10] sm:$0xff] }
  0x2c   :  { %v1072_v15 = vpack.c.bf16 %v330_v13, %v329_v12  ;;  %v332_v16 = vld [vmem:[%s1526_s4 + $0x18] sm:$0xff]  ;;  %v848_v18 = vld [vmem:[%s1525_s3] ss:$0 sm:$0xff]  ;;  %v1336_v47 = vld [vmem:[#allocation2 + $0x8] sm:$0xff]  }
  0x2d   :  { %v1076_v17 = vpack.c.bf16 %v332_v16, %v331_v14  ;;  %v1113_v48 = vld [vmem:[#allocation2 + $0x10] sm:$0xff]   ;;  %v1341_v49 = vld [vmem:[#allocation2 + $0x18] sm:$0xff]  }
  0x2e   :  { %965 = vmatmul.mubr.msk.f32.vlgmr.msra.gmra.mrb[0].mxu0 %vm73_vm0, %v57_v4  ;;  %1073 = vmatprep.subr.bf16.mxu0 %v1072_v15 }
  0x2f   :  { %967 = vmatprep.mubr.msk.f32.mxu0 %vm73_vm0, %v58_v5  ;;  %1075 = vmatpush3.bf16.msra.mxu0 %v1072_v15 }
  0x30   :  { %1077 = vmatprep.subr.bf16.mxu0 %v1076_v17 }
  0x32   :  { %968 = vmatmul.mubr.msk.f32.gmra.mrb[2].mxu0 %vm73_vm0, %v59_v6 }
  0x33   :  { %970 = vmatprep.mubr.msk.f32.mxu0 %vm73_vm0, %v60_v7  ;;  %1079 = vmatpush3.bf16.msra.mxu0 %v1076_v17 }
  0x36   :  { %971 = vmatmul.mubr.msk.f32.gmra.mrb[4].mxu0 %vm73_vm0, %v61_v8 }
  0x37   :  { %973 = vmatprep.mubr.msk.f32.mxu0 %vm73_vm0, %v62_v9 }
  0x3a   :  { %974 = vmatmul.mubr.msk.f32.gmra.mrb[6].mxu0 %vm73_vm0, %v63_v10 }
 0x101   :  { %v966_v19 = vpop.f32.mrb[0].mxu0 }
 0x102   :  { %v170_v20 = vadd.f32 %v966_v19, %v848_v18  ;;  %v164_v21 = vpop.f32.mrb[1].mxu0 }
 0x103   :  { %v165_v22 = vadd.f32 %v848_v18, %v164_v21 }
 0x104   :  { %v1312_v23 = vmax.f32 %v170_v20, 0.0 }
 0x105   :  { %v1314_v24 = vmax.f32 %v165_v22, 0.0  ;;  %v969_v25 = vpop.f32.mrb[2].mxu0 }
 0x106   :  { %v180_v26 = vadd.f32 %v969_v25, %v848_v18  ;;  %v174_v27 = vpop.f32.mrb[3].mxu0  ;;  %v1351_v55 = vmul.f32 0.1, %v1312_v23 }
 0x107   :  { %v175_v28 = vadd.f32 %v848_v18, %v174_v27  ;;  %v227_v29 = vpack.c.bf16 %v1312_v23, %v1314_v24  ;;  %v1347_v51 = vmul.f32 0.1, %v1314_v24 }
 0x108   :  { %v1318_v30 = vmax.f32 %v180_v26, 0.0 }
 0x109   :  { %v1320_v31 = vmax.f32 %v175_v28, 0.0  ;;  %v972_v32 = vpop.f32.mrb[4].mxu0  ;;  %976 = vmatprep.subr.bf16.mxu1 %v227_v29 }
 0x10a   :  { %v190_v33 = vadd.f32 %v972_v32, %v848_v18  ;;  %v184_v34 = vpop.f32.mrb[5].mxu0  ;;  %977 = vmatpush3.bf16.msra.mxu1 %v227_v29  ;;  %v1360_v60 = vmul.f32 0.1, %v1318_v30 }
 0x10b   :  { %v185_v35 = vadd.f32 %v848_v18, %v184_v34  ;;  %v228_v36 = vpack.c.bf16 %v1318_v30, %v1320_v31  ;;  %v1354_v56 = vmul.f32 0.1, %v1320_v31 }
 0x10c   :  { %v1324_v37 = vmax.f32 %v190_v33, 0.0 }
 0x10d   :  { %v1326_v38 = vmax.f32 %v185_v35, 0.0  ;;  %v975_v39 = vpop.f32.mrb[6].mxu0  ;;  %978 = vmatprep.subr.bf16.mxu1 %v228_v36 }
 0x10e   :  { %v200_v40 = vadd.f32 %v975_v39, %v848_v18  ;;  %v194_v41 = vpop.f32.mrb[7].mxu0  ;;  %979 = vmatpush3.bf16.msra.mxu1 %v228_v36  ;;  %v1371_v3 = vmul.f32 0.1, %v1324_v37  ;;  %v877_v36 = vld [vmem:[%s1526_s4 + $0x20] sm:$0xff] }
 0x10f   :  { %v195_v42 = vadd.f32 %v848_v18, %v194_v41  ;;  %v229_v43 = vpack.c.bf16 %v1324_v37, %v1326_v38  ;;  %v1366_v63 = vmul.f32 0.1, %v1326_v38  ;;  %v879_v41 = vld [vmem:[%s1526_s4 + $0x30] sm:$0xff] }
 0x110   :  { %v1330_v44 = vmax.f32 %v200_v40, 0.0 }
 0x111   :  { %v1332_v45 = vmax.f32 %v195_v42, 0.0  ;;  %980 = vmatprep.subr.bf16.mxu1 %v229_v43  ;;  %v880_v42 = vld [vmem:[%s1526_s4 + $0x38] sm:$0xff] }
 0x112   :  { %981 = vmatpush3.bf16.msra.mxu1 %v229_v43  ;;  %v1380_v8 = vmul.f32 0.1, %v1330_v44  ;;  %v1084_v43 = vpack.c.bf16 %v880_v42, %v879_v41 }
 0x113   :  { %v230_v46 = vpack.c.bf16 %v1330_v44, %v1332_v45  ;;  %v1374_v4 = vmul.f32 0.1, %v1332_v45 }
 0x115   :  { %982 = vmatprep.subr.bf16.mxu1 %v230_v46 }
 0x116   :  { %983 = vmatpush3.bf16.msra.mxu1 %v230_v46 }
 0x119   :  { %985 = vmatmul.mubr.msk.bf16.vlgmr.msra.gmra.mrb[0].mxu1 %vm251_vm1, %v1336_v47 }
 0x11a   :  { %988 = vmatprep.mubr.msk.bf16.mxu1 %vm251_vm1, %v1113_v48 }
 0x121   :  { %989 = vmatmul.mubr.msk.bf16.gmra.mrb[4].mxu1 %vm251_vm1, %v1341_v49 }
 0x122   :  { %1024 = vmatprep.mubr.msk.bf16.mxu1 %vm251_vm1, %v1113_v48 }
 0x1ec   :  { %v986_v50 = vpop.f32.mrb[0].mxu1 }
 0x1ed   :  { %v298_v52 = vpop.f32.mrb[1].mxu1  ;;  %v307_v59 = vadd.f32 %v986_v50, %v1354_v56 }
 0x1ee   :  { %v299_v53 = vadd.f32 %v298_v52, %v1347_v51  ;;  %v987_v54 = vpop.f32.mrb[2].mxu1 }
 0x1ef   :  { %v301_v57 = vpop.f32.mrb[3].mxu1  ;;  %v310_v61 = vadd.f32 %v987_v54, %v1360_v60 }
 0x1f0   :  { %v302_v58 = vadd.f32 %v301_v57, %v1351_v55  ;;  %1000 = vmatprep.mubr.msk.f32.mxu0 %vm333_vm2, %v299_v53 }
 0x1f2   :  { %1001 = vmatmul.mubr.msk.f32.vlgmr.msra.gmra.mrb[8].mxu0 %vm333_vm2, %v302_v58 }
 0x1f3   :  { %1003 = vmatprep.mubr.msk.f32.mxu0 %vm333_vm2, %v307_v59 }
 0x1f4   :  { %v990_v62 = vpop.f32.mrb[4].mxu1 }
 0x1f5   :  { %v314_v0 = vpop.f32.mrb[5].mxu1  ;;  %v323_v7 = vadd.f32 %v990_v62, %v1374_v4 }
 0x1f6   :  { %v315_v1 = vadd.f32 %v314_v0, %v1366_v63  ;;  %v991_v2 = vpop.f32.mrb[6].mxu1  ;;  %1004 = vmatmul.mubr.msk.f32.gmra.mrb[10].mxu0 %vm333_vm2, %v310_v61 }
 0x1f7   :  { %v317_v5 = vpop.f32.mrb[7].mxu1  ;;  %v326_v9 = vadd.f32 %v991_v2, %v1380_v8 }
 0x1f8   :  { %v318_v6 = vadd.f32 %v317_v5, %v1371_v3  ;;  %1006 = vmatprep.mubr.msk.f32.mxu0 %vm333_vm2, %v315_v1 }
 0x1fa   :  { %1007 = vmatmul.mubr.msk.f32.gmra.mrb[12].mxu0 %vm333_vm2, %v318_v6 }
 0x1fb   :  { %1009 = vmatprep.mubr.msk.f32.mxu0 %vm333_vm2, %v323_v7 }
 0x1fe   :  { %1010 = vmatmul.mubr.msk.f32.gmra.mrb[14].mxu0 %vm333_vm2, %v326_v9 }
 0x1ff   :  { %1020 = vmatprep.mubr.msk.bf16.mxu0 %vm251_vm1, %v1293_v11 }
 0x2c5   :  { %v1002_v10 = vpop.f32.mrb[8].mxu0 }
 0x2c6   :  { %v1389_v12 = vadd.f32 %v1002_v10, %v1312_v23  ;;  %v424_v13 = vpop.f32.mrb[9].mxu0 }
 0x2c7   :  { %v1392_v14 = vadd.f32 %v424_v13, %v1314_v24 }
 0x2c8   :  { %v464_v15 = vmax.f32 %v1389_v12, 0.0 }
 0x2c9   :  { %v463_v16 = vmax.f32 %v1392_v14, 0.0  ;;  %v1005_v17 = vpop.f32.mrb[10].mxu0 }
 0x2ca   :  { %v1397_v18 = vadd.f32 %v1005_v17, %v1318_v30  ;;  %v434_v19 = vpop.f32.mrb[11].mxu0 }
 0x2cb   :  { %v471_v11 = vpack.c.bf16 %v464_v15, %v463_v16  ;;  %v1404_v20 = vadd.f32 %v434_v19, %v1320_v31 }
 0x2cc   :  { %v466_v21 = vmax.f32 %v1397_v18, 0.0 }
 0x2cd   :  { %v465_v22 = vmax.f32 %v1404_v20, 0.0  ;;  %v1008_v23 = vpop.f32.mrb[12].mxu0  ;;  %1012 = vmatprep.subr.bf16.mxu0 %v471_v11  ;;  %1096 = vmatprep.subr.bf16.mxu1 %v471_v11 }
 0x2ce   :  { %v1409_v24 = vadd.f32 %v1008_v23, %v1324_v37  ;;  %v444_v25 = vpop.f32.mrb[13].mxu0  ;;  %1013 = vmatpush3.bf16.msra.mxu0 %v471_v11  ;;  %1100 = vmatpush3.bf16.msra.mxu1 %v471_v11  ;;  %v878_v37 = vld [vmem:[%s1526_s4 + $0x28] sm:$0xff] }
 0x2cf   :  { %v472_v26 = vpack.c.bf16 %v466_v21, %v465_v22  ;;  %v1416_v27 = vadd.f32 %v444_v25, %v1326_v38  ;;  %v1080_v40 = vpack.c.bf16 %v878_v37, %v877_v36 }
 0x2d0   :  { %v468_v28 = vmax.f32 %v1409_v24, 0.0 }
 0x2d1   :  { %v467_v29 = vmax.f32 %v1416_v27, 0.0  ;;  %v1011_v30 = vpop.f32.mrb[14].mxu0  ;;  %1014 = vmatprep.subr.bf16.mxu0 %v472_v26  ;;  %1097 = vmatprep.subr.bf16.mxu1 %v472_v26 }
 0x2d2   :  { %v1421_v31 = vadd.f32 %v1011_v30, %v1330_v44  ;;  %v454_v32 = vpop.f32.mrb[15].mxu0  ;;  %1015 = vmatpush3.bf16.msra.mxu0 %v472_v26  ;;  %1101 = vmatpush3.bf16.msra.mxu1 %v472_v26  ;;  %v682_v44 = vld [vmem:[%s1527_s5] sm:$0xff] }
 0x2d3   :  { %v473_v33 = vpack.c.bf16 %v468_v28, %v467_v29  ;;  %v1428_v34 = vadd.f32 %v454_v32, %v1332_v45  ;;  %v683_v45 = vld [vmem:[%s1527_s5 + $0x8] sm:$0xff]  ;;  %v889_v26 = vld [vmem:[%s1528_s6] ss:$0 sm:$0xff]  ;;  %s1159_s6 = scalar_lea.vmem %s836_s22, 1024 }
 0x2d4   :  { %v470_v35 = vmax.f32 %v1421_v31, 0.0  ;;  %v1088_v46 = vpack.c.bf16 %v683_v45, %v682_v44  ;;  %p1160_p2 = scmp.ne.s32.totalorder %s836_s22, %s1159_s6  ;;  %p1165_p4 = scmp.lt.s32.totalorder %s1159_s6, %s1159_s6 }
 0x2d5   :  { %v469_v38 = vmax.f32 %v1428_v34, 0.0  ;;  %1016 = vmatprep.subr.bf16.mxu0 %v473_v33  ;;  %1098 = vmatprep.subr.bf16.mxu1 %v473_v33 }
 0x2d6   :  { %1017 = vmatpush3.bf16.msra.mxu0 %v473_v33  ;;  %1102 = vmatpush3.bf16.msra.mxu1 %v473_v33  ;;  %p1166_p5 = por %p1165_p4, %p1164_p3 }
 0x2d7   :  { %v474_v39 = vpack.c.bf16 %v470_v35, %v469_v38 }
 0x2d8   :  { %p1167_p6 = pnand %p1166_p5, %p1160_p2 }
 0x2d9   :  { %1018 = vmatprep.subr.bf16.mxu0 %v474_v39  ;;  %1099 = vmatprep.subr.bf16.mxu1 %v474_v39 }
 0x2da   :  { %1019 = vmatpush3.bf16.msra.mxu0 %v474_v39  ;;  %1103 = vmatpush3.bf16.msra.mxu1 %v474_v39 }
 0x2db   :  { %1081 = vmatprep.subr.bf16.mxu0 %v1080_v40  ;;  %1089 = vmatprep.subr.bf16.mxu1 %v1088_v46 }
 0x2dd   :  { %1021 = vmatmul.mubr.msk.bf16.vlgmr.msra.gmra.mrb[16].mxu0 %vm251_vm1, %v1336_v47  ;;  %1025 = vmatmul.mubr.msk.bf16.vlgmr.msra.gmra.mrb[8].mxu1 %vm251_vm1, %v1341_v49 }
 0x2de   :  { %1083 = vmatpush3.bf16.msra.mxu0 %v1080_v40  ;;  %1091 = vmatpush3.bf16.msra.mxu1 %v1088_v46 }
 0x2df   :  { %1085 = vmatprep.subr.bf16.mxu0 %v1084_v43 }
 0x2e2   :  { %1087 = vmatpush3.bf16.msra.mxu0 %v1084_v43 }
 0x3b0   :  { %v1022_v47 = vpop.f32.mrb[16].mxu0  ;;  %v1026_v48 = vpop.f32.mrb[8].mxu1 }
 0x3b1   :  { %v509_v49 = vpop.f32.mrb[17].mxu0  ;;  %v525_v50 = vpop.f32.mrb[9].mxu1  ;;  %v518_v61 = vadd.f32 %v1022_v47, %v1354_v56 }
 0x3b2   :  { %v510_v52 = vadd.f32 %v509_v49, %v1347_v51  ;;  %v1023_v53 = vpop.f32.mrb[18].mxu0  ;;  %v1027_v54 = vpop.f32.mrb[10].mxu1  ;;  %v526_v0 = vadd.f32 %v525_v50, %v1366_v63  ;;  %v685_v63 = vld [vmem:[%s1527_s5 + $0x18] sm:$0xff] }
 0x3b3   :  { %v512_v57 = vpop.f32.mrb[19].mxu0  ;;  %v528_v58 = vpop.f32.mrb[11].mxu1  ;;  %v521_v62 = vadd.f32 %v1023_v53, %v1360_v60  ;;  %v537_v56 = vadd.f32 %v1027_v54, %v1380_v8  ;;  %v684_v60 = vld [vmem:[%s1527_s5 + $0x10] sm:$0xff] }
 0x3b4   :  { %v513_v59 = vadd.f32 %v512_v57, %v1351_v55  ;;  %1036 = vmatprep.mubr.msk.f32.mxu0 %vm333_vm2, %v510_v52  ;;  %v529_v51 = vadd.f32 %v528_v58, %v1371_v3  ;;  %v534_v55 = vadd.f32 %v1026_v48, %v1374_v4  ;;  %v1092_v1 = vpack.c.bf16 %v685_v63, %v684_v60 }
 0x3b6   :  { %1037 = vmatmul.mubr.msk.f32.vlgmr.msra.gmra.mrb[20].mxu0 %vm333_vm2, %v513_v59  ;;  %1093 = vmatprep.subr.bf16.mxu1 %v1092_v1 }
 0x3b7   :  { %1039 = vmatprep.mubr.msk.f32.mxu0 %vm333_vm2, %v518_v61  ;;  %1095 = vmatpush3.bf16.msra.mxu1 %v1092_v1 }
 0x3ba   :  { %1040 = vmatmul.mubr.msk.f32.gmra.mrb[22].mxu0 %vm333_vm2, %v521_v62 }
 0x3bb   :  { %1042 = vmatprep.mubr.msk.f32.mxu0 %vm333_vm2, %v526_v0 }
 0x3be   :  { %1043 = vmatmul.mubr.msk.f32.gmra.mrb[24].mxu0 %vm333_vm2, %v529_v51 }
 0x3bf   :  { %1045 = vmatprep.mubr.msk.f32.mxu0 %vm333_vm2, %v534_v55 }
 0x3c2   :  { %1046 = vmatmul.mubr.msk.f32.gmra.mrb[26].mxu0 %vm333_vm2, %v537_v56 }
 0x489   :  { %v1038_v2 = vpop.f32.mrb[20].mxu0 }
 0x48a   :  { %v641_v3 = vadd.f32 %v1038_v2, %v464_v15  ;;  %v635_v4 = vpop.f32.mrb[21].mxu0 }
 0x48b   :  { %v636_v5 = vadd.f32 %v635_v4, %v463_v16 }
 0x48c   :  { %v675_v8 = vmax.f32 %v641_v3, 0.0 }
 0x48d   :  { %v674_v6 = vmax.f32 %v636_v5, 0.0  ;;  %v1041_v7 = vpop.f32.mrb[22].mxu0 }
 0x48e   :  { %v651_v9 = vadd.f32 %v1041_v7, %v466_v21  ;;  %v645_v10 = vpop.f32.mrb[23].mxu0 }
 0x48f   :  { %v646_v13 = vadd.f32 %v645_v10, %v465_v22  ;;  %1056 = vmatprep.mubr.msk.f32.mxu1 %vm333_vm2, %v674_v6 }
 0x490   :  { %1057 = vmatmul.mubr.msk.f32.vlgmr.msra.gmra.mrb[12].mxu1 %vm333_vm2, %v675_v8  ;;  %v677_v17 = vmax.f32 %v651_v9, 0.0 }
 0x491   :  { %v676_v12 = vmax.f32 %v646_v13, 0.0  ;;  %v1044_v15 = vpop.f32.mrb[24].mxu0 }
 0x492   :  { %v661_v14 = vadd.f32 %v1044_v15, %v468_v28  ;;  %v655_v16 = vpop.f32.mrb[25].mxu0 }
 0x493   :  { %v656_v19 = vadd.f32 %v655_v16, %v467_v29  ;;  %1059 = vmatprep.mubr.msk.f32.mxu1 %vm333_vm2, %v676_v12 }
 0x494   :  { %1060 = vmatmul.mubr.msk.f32.gmra.mrb[14].mxu1 %vm333_vm2, %v677_v17  ;;  %v679_v20 = vmax.f32 %v661_v14, 0.0 }
 0x495   :  { %v678_v18 = vmax.f32 %v656_v19, 0.0  ;;  %v1047_v11 = vpop.f32.mrb[26].mxu0 }
 0x496   :  { %v671_v21 = vadd.f32 %v1047_v11, %v470_v35  ;;  %v665_v22 = vpop.f32.mrb[27].mxu0 }
 0x497   :  { %v666_v23 = vadd.f32 %v665_v22, %v469_v38  ;;  %1062 = vmatprep.mubr.msk.f32.mxu1 %vm333_vm2, %v678_v18 }
 0x498   :  { %1063 = vmatmul.mubr.msk.f32.gmra.mrb[16].mxu1 %vm333_vm2, %v679_v20  ;;  %v681_v25 = vmax.f32 %v671_v21, 0.0 }
 0x499   :  { %v680_v24 = vmax.f32 %v666_v23, 0.0 }
 0x49b   :  { %1065 = vmatprep.mubr.msk.f32.mxu1 %vm333_vm2, %v680_v24 }
 0x49c   :  { %1066 = vmatmul.mubr.msk.f32.gmra.mrb[18].mxu1 %vm333_vm2, %v681_v25 }
 0x563   :  { %v1058_v27 = vpop.f32.mrb[12].mxu1 }
 0x564   :  { %v789_v28 = vadd.f32 %v1058_v27, %v889_v26  ;;  %v783_v29 = vpop.f32.mrb[13].mxu1 }
 0x565   :  { %v784_v30 = vadd.f32 %v889_v26, %v783_v29 }
 0x566   :  { %823 = vst [vmem:[#allocation7 + $0x8] sm:$0xff] %v789_v28 }
 0x567   :  { %822 = vst [vmem:[#allocation7] sm:$0xff] %v784_v30  ;;  %v1061_v31 = vpop.f32.mrb[14].mxu1 }
 0x568   :  { %v799_v32 = vadd.f32 %v1061_v31, %v889_v26  ;;  %v793_v33 = vpop.f32.mrb[15].mxu1 }
 0x569   :  { %v794_v34 = vadd.f32 %v889_v26, %v793_v33 }
 0x56a   :  { %825 = vst [vmem:[#allocation7 + $0x18] sm:$0xff] %v799_v32 }
 0x56b   :  { %824 = vst [vmem:[#allocation7 + $0x10] sm:$0xff] %v794_v34  ;;  %v1064_v35 = vpop.f32.mrb[16].mxu1 }
 0x56c   :  { %v809_v36 = vadd.f32 %v1064_v35, %v889_v26  ;;  %v803_v37 = vpop.f32.mrb[17].mxu1 }
 0x56d   :  { %v804_v38 = vadd.f32 %v889_v26, %v803_v37 }
 0x56e   :  { %827 = vst [vmem:[#allocation7 + $0x28] sm:$0xff] %v809_v36 }
 0x56f   :  { %826 = vst [vmem:[#allocation7 + $0x20] sm:$0xff] %v804_v38  ;;  %v1067_v39 = vpop.f32.mrb[18].mxu1 }
 0x570   :  { %v819_v40 = vadd.f32 %v1067_v39, %v889_v26  ;;  %v813_v41 = vpop.f32.mrb[19].mxu1 }
 0x571   :  { %v814_v42 = vadd.f32 %v889_v26, %v813_v41 }
 0x572   :  { %829 = vst [vmem:[#allocation7 + $0x38] sm:$0xff] %v819_v40 }
 0x573   :  { %828 = vst [vmem:[#allocation7 + $0x30] sm:$0xff] %v814_v42 }
 0x574   :  { %1170 = shalt.err (!%p1167_p6)
}
 0x575   :  { %s1171_s26 = scalar_lea.hbm %s1529_s7, 1024 }
 0x576   :  { %p1172_p7 = scmp.ne.s32.totalorder %s1529_s7, %s1171_s26  ;;  %p1175_p8 = scmp.lt.u32.totalorder %s1171_s26, %s1529_s7 }
 0x578   :  { %p1177_p9 = pnand %p1175_p8, %p1172_p7 }
 0x57a   :  { %1180 = shalt.err (!%p1177_p9)
}
 0x57b   :  { %841 = dma.vmem_to_hbm [thread:$0]  %s836_s22, 1024, %s1529_s7, [#allocation4], %s1191_s1, %s1191_s1, %s1192_s25  }
 0x57c   :  { %1185 = dma.done.wait [#allocation4], 1024  }
 0x57d   :  { %1186 = vsyncadd [#allocation4], 4294966272 }
 0x57e   :  { %845 = vsyncpa [#allocation3], 1 }
 0x57f   :  { %846 = vsyncpa [#allocation6], 1 }
 0x580   :  { %847 = vsyncpa [#allocation4], 1 }

</bundles_post_ra>
